<compile_context>
chip_gen: v7x
topology: tpu7x:2x2x1
jax: 0.10.0
libtpu: 0.0.40
codegen_flags: <defaults>
</compile_context>

<pallas_src>
import functools

import jax
import jax.numpy as jnp
from jax.experimental import pallas as pl
from jax.experimental.pallas import tpu as pltpu


def _round_up(x, m):
    return ((x + m - 1) // m) * m


def _proto_fused_kernel(x_ref, w_ref, o_ref):
    # x_ref: [tm, D], w_ref: [D, tn] (weights pre-transposed at init), o_ref: [tm, tn]
    # Single MXU matmul per grid point, f32 accumulation, no in-kernel relayout.
    o_ref[...] = jnp.dot(
        x_ref[...], w_ref[...], preferred_element_type=jnp.float32
    ).astype(o_ref.dtype)


def _pick_tiles(n_pad_min, k_pad_min, d, bytes_per=4, budget=8 * 1024 * 1024):
    """Choose (tm, tn): (8,128)-aligned, double-buffered-VMEM-safe on all gens."""
    tm = min(256, n_pad_min)   # multiple of 8
    tn = min(512, k_pad_min)   # multiple of 128

    def vmem(tm_, tn_):
        # x block + w block + out block, x2 for double buffering.
        return 2 * bytes_per * (tm_ * d + d * tn_ + tm_ * tn_)

    while vmem(tm, tn) > budget and tn > 128:
        tn = max(128, _round_up(tn // 2, 128))
    while vmem(tm, tn) > budget and tm > 8:
        tm = max(8, _round_up(tm // 2, 8))
    return tm, tn


@functools.partial(jax.jit, static_argnames=("tm", "tn"))
def _fused_prototypes_matmul(x_pad, w_all, tm, tn):
    """x_pad: [N_pad, D] f32, w_all: [D, K_pad] f32 -> [N_pad, K_pad] f32."""
    n_pad, d = x_pad.shape
    d2, k_pad = w_all.shape
    assert d == d2
    assert n_pad % tm == 0 and k_pad % tn == 0

    grid = (n_pad // tm, k_pad // tn)
    flops = 2 * n_pad * d * k_pad
    bytes_accessed = 4 * (n_pad * d + d * k_pad + n_pad * k_pad)

    return pl.pallas_call(
        _proto_fused_kernel,
        out_shape=jax.ShapeDtypeStruct((n_pad, k_pad), jnp.float32),
        grid=grid,
        in_specs=[
            # x streams only along the N grid axis (full D per block).
            pl.BlockSpec((tm, d), lambda i, j: (i, 0)),
            # Weight tile is independent of the N-tile index (weight-stationary).
            pl.BlockSpec((d, tn), lambda i, j: (0, j)),
        ],
        out_specs=pl.BlockSpec((tm, tn), lambda i, j: (i, j)),
        compiler_params=pltpu.CompilerParams(
            dimension_semantics=("parallel", "parallel"),
        ),
        cost_estimate=pl.CostEstimate(
            flops=flops, transcendentals=0, bytes_accessed=bytes_accessed
        ),
    )(x_pad, w_all)


class MultiPrototypesPallas:
    """JAX/Pallas equivalent of the PyTorch MultiPrototypes module."""

    def __init__(self, output_dim, nmb_prototypes, key):
        self.output_dim = int(output_dim)
        self.nmb_prototypes = [int(k) for k in nmb_prototypes]
        self.nmb_heads = len(self.nmb_prototypes)

        # Per-head weights in PyTorch nn.Linear storage layout [k_i, D]
        # (kept for inspection / reference checking). Init matches nn.Linear's
        # effective kaiming-uniform bound U(-1/sqrt(fan_in), 1/sqrt(fan_in)).
        bound = 1.0 / float(output_dim) ** 0.5
        self.weights = []
        for k in self.nmb_prototypes:
            key, sub = jax.random.split(key)
            w = jax.random.uniform(
                sub, (k, output_dim), dtype=jnp.float32, minval=-bound, maxval=bound
            )
            self.weights.append(w)

        # Head boundaries along the fused K axis.
        self.k_total = sum(self.nmb_prototypes)
        offs = [0]
        for k in self.nmb_prototypes:
            offs.append(offs[-1] + k)
        self._offsets = offs

        # Fused, pre-transposed, zero-padded weight: [D, K_pad], K_pad % 128 == 0.
        w_cat = jnp.concatenate(self.weights, axis=0)            # [K_total, D]
        k_pad_min = _round_up(self.k_total, 128)
        w_cat = jnp.pad(w_cat, ((0, k_pad_min - self.k_total), (0, 0)))
        self.w_all = jnp.transpose(w_cat)                        # [D, K_pad]

    def __call__(self, x):
        n, d = x.shape
        assert d == self.output_dim

        n_pad_min = _round_up(n, 8)
        tm, tn = _pick_tiles(n_pad_min, self.w_all.shape[1], d)

        n_pad = _round_up(n, tm)
        k_pad = _round_up(self.w_all.shape[1], tn)

        x_pad = x.astype(jnp.float32)
        if n_pad != n:
            x_pad = jnp.pad(x_pad, ((0, n_pad - n), (0, 0)))
        w_all = self.w_all
        if k_pad != w_all.shape[1]:
            w_all = jnp.pad(w_all, ((0, 0), (0, k_pad - w_all.shape[1])))

        out_full = _fused_prototypes_matmul(x_pad, w_all, tm, tn)

        # Per-head outputs are free static slices of the fused result;
        # padded rows/columns (zeros) are dropped here.
        outs = []
        for i in range(self.nmb_heads):
            lo, hi = self._offsets[i], self._offsets[i + 1]
            outs.append(out_full[:n, lo:hi])
        return outs


if __name__ == "__main__":
    key = jax.random.PRNGKey(0)
    k_x, k_params = jax.random.split(key)

    # Small shapes consistent with the module's forward: x is [N, output_dim].
    N = 8
    OUTPUT_DIM = 32
    NMB_PROTOTYPES = [16, 24, 8]

    x = jax.random.normal(k_x, (N, OUTPUT_DIM), dtype=jnp.float32)

    model = MultiPrototypesPallas(OUTPUT_DIM, NMB_PROTOTYPES, k_params)
    outs = model(x)
    outs = [jax.block_until_ready(o) for o in outs]

    # Reference check against plain JAX (x @ W_i.T per head).
    for o, w, k in zip(outs, model.weights, NMB_PROTOTYPES):
        assert o.shape == (N, k), (o.shape, (N, k))
        ref = x @ w.T
        assert jnp.allclose(o, ref, atol=1e-5, rtol=1e-5)

    print("KERNEL_OK")
</pallas_src>

<mosaic_0001>
module attributes {stable_mosaic.version = 11 : i64} {
  func.func @_proto_fused_kernel(%arg0: i32, %arg1: i32, %arg2: memref<8x32xf32, #tpu.memory_space<vmem>>, %arg3: memref<32x128xf32, #tpu.memory_space<vmem>>, %arg4: memref<8x128xf32, #tpu.memory_space<vmem>>) attributes {dimension_semantics = [#tpu.dimension_semantics<parallel>, #tpu.dimension_semantics<parallel>], iteration_bounds = array<i64: 1, 1>, scalar_prefetch = 0 : i64, scratch_operands = 0 : i64, tpu.core_type = #tpu.core_type<tc>, window_params = [{transform_indices = @transform_0, window_bounds = array<i64: 8, 32>}, {transform_indices = @transform_1, window_bounds = array<i64: 32, 128>}, {transform_indices = @transform_2, window_bounds = array<i64: 8, 128>}]} {
    %c0 = arith.constant 0 : index
    %c0_0 = arith.constant 0 : index
    %0 = vector.load %arg2[%c0, %c0_0] : memref<8x32xf32, #tpu.memory_space<vmem>>, vector<8x32xf32>
    %c0_1 = arith.constant 0 : index
    %c0_2 = arith.constant 0 : index
    %1 = vector.load %arg3[%c0_1, %c0_2] : memref<32x128xf32, #tpu.memory_space<vmem>>, vector<32x128xf32>
    %cst = arith.constant dense<0.000000e+00> : vector<8x128xf32>
    %2 = tpu.matmul %0, %1, %cst {dimension_numbers = #tpu.dot_dimension_numbers<[1], [0], [0], [1], [0, 0, 1, 1], [], []>} : vector<8x32xf32>, vector<32x128xf32>, vector<8x128xf32> -> vector<8x128xf32>
    %c0_3 = arith.constant 0 : index
    %c0_4 = arith.constant 0 : index
    %3 = vector.load %arg4[%c0_3, %c0_4] : memref<8x128xf32, #tpu.memory_space<vmem>>, vector<8x128xf32>
    tpu.vector_store %arg4[%c0_3, %c0_4], %2 {strides = array<i32>} : memref<8x128xf32, #tpu.memory_space<vmem>>, vector<8x128xf32>,
    return
  }
  func.func @transform_0(%arg0: i32, %arg1: i32) -> (i32, i32) {
    %c0_i32 = arith.constant 0 : i32
    %c0_i32_0 = arith.constant 0 : i32
    return %arg0, %c0_i32 : i32, i32
  }
  func.func @transform_1(%arg0: i32, %arg1: i32) -> (i32, i32) {
    %c0_i32 = arith.constant 0 : i32
    %c0_i32_0 = arith.constant 0 : i32
    return %c0_i32, %arg1 : i32, i32
  }
  func.func @transform_2(%arg0: i32, %arg1: i32) -> (i32, i32) {
    %c0_i32 = arith.constant 0 : i32
    return %arg0, %arg1 : i32, i32
  }
}

</mosaic_0001>

<bundles_post_ra>
// kernel: _fused_prototypes_matmul.1
= control target key start
LH: loop header
LB: loop body
LE: loop exit
PB: predicated region body
PF: predicated region fallthrough
CT: control target
= control target key end

     0   :  { %7 = vsyncpa [#allocation3], 0  ;;  %s303_s0 = inlined_call_operand.hbm [shape: f32[8,32], index: 0, kind: input, shape index: {}]   ;;  %s304_s1 = inlined_call_operand.hbm [shape: f32[32,128], index: 1, kind: input, shape index: {}]   ;;  %s305_s2 = inlined_call_operand.hbm [shape: f32[8,128], index: 2, kind: output, shape index: {}]  }
   0x1   :  { %8 = vsyncpa [#allocation6], 0 }
   0x2   :  { %9 = vsyncpa [#allocation4], 0  ;;  %s237_s9 = smov [#allocation2]   ;;  %s238_s11 = smov [#allocation5]  }
   0x3   :  { %s16_s10 = sshll.u32 %s237_s9, 4  ;;  %s25_s12 = sshll.u32 %s238_s11, 4  ;;  %s17_s10 = int_to_ptr.vmem [resolvable:$true] %s16_s10  ;;  %s260_s12 = int_to_ptr.vmem [resolvable:$true] %s25_s12 }
   0x4   :  { %s165_s15 = scalar_lea.hbm %s303_s0, 128 }
   0x5   :  { %p166_p0 = scmp.ne.s32.totalorder %s303_s0, %s165_s15  ;;  %p169_p1 = scmp.lt.u32.totalorder %s165_s15, %s303_s0 }
   0x7   :  { %p171_p2 = pnand %p169_p1, %p166_p0 }
   0x9   :  { %174 = shalt.err (!%p171_p2)
}
   0xa   :  { %s175_s20 = scalar_lea.vmem %s17_s10, 128  ;;  %p180_p4 = scmp.lt.s32.totalorder %s17_s10, %s17_s10 }
   0xb   :  { %p176_p3 = scmp.ne.s32.totalorder %s17_s10, %s175_s20  ;;  %p181_p5 = scmp.lt.s32.totalorder %s175_s20, %s175_s20 }
   0xd   :  { %p182_p6 = por %p181_p5, %p180_p4 }
   0xf   :  { %p183_p7 = pnand %p182_p6, %p176_p3 }
  0x11   :  { %186 = shalt.err (!%p183_p7)
}
  0x12   :  { %19 = dma.hbm_to_vmem [thread:$0]  %s303_s0, 128, %s17_s10, [#allocation3]  }
  0x13   :  { %s187_s25 = scalar_lea.hbm %s304_s1, 512 }
  0x14   :  { %p188_p8 = scmp.ne.s32.totalorder %s304_s1, %s187_s25  ;;  %p191_p9 = scmp.lt.u32.totalorder %s187_s25, %s304_s1 }
  0x16   :  { %p193_p10 = pnand %p191_p9, %p188_p8 }
  0x18   :  { %196 = shalt.err (!%p193_p10)
}
  0x19   :  { %s197_s30 = scalar_lea.vmem %s260_s12, 512  ;;  %p202_p12 = scmp.lt.s32.totalorder %s260_s12, %s260_s12 }
  0x1a   :  { %p198_p11 = scmp.ne.s32.totalorder %s260_s12, %s197_s30  ;;  %p203_p13 = scmp.lt.s32.totalorder %s197_s30, %s197_s30 }
  0x1c   :  { %p204_p0 = por %p203_p13, %p202_p12 }
  0x1e   :  { %p205_p1 = pnand %p204_p0, %p198_p11 }
  0x20   :  { %208 = shalt.err (!%p205_p1)
}
  0x21   :  { %s239_s0 = smov 128   ;;  %s240_s3 = smov 8  }
  0x22   :  { %31 = dma.hbm_to_vmem [thread:$0]  %s304_s1, 512, %s260_s12, [#allocation6], %s239_s0, %s239_s0, %s240_s3  }
  0x23   :  { %231 = dma.done.wait [#allocation3], 128  }
  0x24   :  { %232 = vsyncadd [#allocation3], 4294967168 }
  0x25   :  { %233 = dma.done.wait [#allocation6], 512  }
  0x26   :  { %234 = vsyncadd [#allocation6], 4294966784  ;;  %v241_v0 = vmov 0.0|0.0   ;;  %vm242_vm0 = vmmov 0   ;;  %v243_v1 = vmov 0.0   ;;  %v39_v2 = vld [vmem:[#allocation5] sm:$0xff] }
  0x27   :  { %151 = vmatprep.subr.bf16.mxu0 %v241_v0  ;;  %148 = vmatprep.mubr.msk.f32.mxu0 %vm242_vm0, %v243_v1  ;;  %v40_v3 = vld [vmem:[#allocation5 + $0x8] sm:$0xff]  ;;  %v41_v4 = vld [vmem:[#allocation5 + $0x10] sm:$0xff]  ;;  %v42_v6 = vld [vmem:[#allocation5 + $0x18] sm:$0xff]  ;;  %vm43_vm1 = vcmask 261120   ;;  %s244_s1 = smov [#allocation7]  }
  0x28   :  { %v152_v5 = vpack.c.bf16 %v40_v3, %v39_v2  ;;  %v155_v7 = vpack.c.bf16 %v42_v6, %v41_v4  ;;  %v38_v8 = vld [vmem:[#allocation2] sm:$0xff]  ;;  %s124_s6 = sshll.u32 %s244_s1, 4  ;;  %s125_s6 = int_to_ptr.vmem [resolvable:$true] %s124_s6 }
  0x29   :  { %s209_s7 = scalar_lea.vmem %s125_s6, 128  ;;  %p214_p3 = scmp.lt.s32.totalorder %s125_s6, %s125_s6 }
  0x2a   :  { %153 = vmatpush3.bf16.msra.mxu0 %v152_v5  ;;  %p210_p2 = scmp.ne.s32.totalorder %s125_s6, %s209_s7  ;;  %p215_p4 = scmp.lt.s32.totalorder %s209_s7, %s209_s7 }
  0x2b   :  { %154 = vmatprep.subr.bf16.mxu0 %v241_v0 }
  0x2c   :  { %p216_p5 = por %p215_p4, %p214_p3 }
  0x2e   :  { %156 = vmatpush3.bf16.msra.mxu0 %v155_v7  ;;  %p217_p6 = pnand %p216_p5, %p210_p2 }
  0x31   :  { %149 = vmatmul.mubr.msk.f32.vlgmr.msra.gmra.mrb[0].mxu0 %vm43_vm1, %v38_v8 }
 0x104   :  { %v113_v9 = vpop.f32.mrb[0].mxu0 }
 0x105   :  { %117 = vst [vmem:[#allocation7] sm:$0xff] %v113_v9  ;;  %v150_v10 = vpop.f32.mrb[1].mxu0 }
 0x106   :  { %220 = shalt.err (!%p217_p6)
}
 0x107   :  { %s221_s10 = scalar_lea.hbm %s305_s2, 128 }
 0x108   :  { %p222_p7 = scmp.ne.s32.totalorder %s305_s2, %s221_s10  ;;  %p225_p8 = scmp.lt.u32.totalorder %s221_s10, %s305_s2 }
 0x10a   :  { %p227_p9 = pnand %p225_p8, %p222_p7 }
 0x10c   :  { %230 = shalt.err (!%p227_p9)
}
 0x10d   :  { %127 = dma.vmem_to_hbm [thread:$0]  %s125_s6, 128, %s305_s2, [#allocation4]  }
 0x10e   :  { %235 = dma.done.wait [#allocation4], 128  }
 0x10f   :  { %236 = vsyncadd [#allocation4], 4294967168 }
 0x110   :  { %131 = vsyncpa [#allocation3], 1 }
 0x111   :  { %132 = vsyncpa [#allocation6], 1 }
 0x112   :  { %133 = vsyncpa [#allocation4], 1 }

</bundles_post_ra>
